<compile_context>
chip_gen: v7x
topology: tpu7x:2x2x1
jax: 0.10.0
libtpu: 0.0.40
codegen_flags: <defaults>
</compile_context>

<pallas_src>
import jax
import jax.numpy as jnp
from jax.experimental import pallas as pl
from jax.experimental.pallas import tpu as pltpu


def _round_up(x, m):
    return ((x + m - 1) // m) * m


def _sigmoid(z):
    # 1/(1+e^-z) == 0.5*(tanh(0.5*z)+1): a single EUP op per element.
    return 0.5 * (jnp.tanh(0.5 * z) + 1.0)


def _ncd_kernel(theta_ref, beta_ref, disc_ref, kp_ref,
                w1t_ref, b1t_ref, w2_ref, b2_ref, out_ref):
    f32 = jnp.float32
    # Interaction term in f32 (safe on v5e's f32-only VPU); inputs arrive bf16,
    # already sigmoided on the host.  Layout is [K, tile_b] (batch on lanes).
    x = (disc_ref[...].astype(f32)                                   # [1, TB]
         * (theta_ref[...].astype(f32) - beta_ref[...].astype(f32))  # [K, TB]
         * kp_ref[...].astype(f32))                                  # [K, TB]

    # FC1 on the MXU in the transposed orientation: W1^T [H,K] @ x^T [K,TB].
    # bf16 operands, f32 accumulate; no XLU transpose anywhere.
    h = jnp.dot(w1t_ref[...], x.astype(w1t_ref.dtype),
                preferred_element_type=f32)                          # [H, TB]
    h = _sigmoid(h + b1t_ref[...])                                   # b1t: [H, 1]

    # FC2 as an 8-row f32 slab (row 0 holds the real W2^T, rows 1..7 unused —
    # we slice row 0 explicitly, so their contents never reach the output):
    #   [8, H] @ [H, TB] -> [8, TB], natural MXU orientation, f32 throughout.
    logits = jnp.dot(w2_ref[...], h, preferred_element_type=f32)     # [8, TB]
    out_ref[...] = _sigmoid(logits[0:1, :] + b2_ref[...])            # [1, TB]


def _ncd_pallas(theta_t, beta_t, disc_t, kp_t, w1, b1, w2, b2,
                *, tile_b, core_parallel=True):
    """theta_t/beta_t/kp_t: [K, Bp] bf16 (theta/beta already sigmoided),
    disc_t: [1, Bp] bf16 (already sigmoided).  Bp must be a multiple of tile_b.
    Returns pred: [Bp] float32 in (0, 1)."""
    bf16, f32 = jnp.bfloat16, jnp.float32
    K, Bp = theta_t.shape
    H = w1.shape[1]
    assert Bp % tile_b == 0 and tile_b % 128 == 0
    n_tiles = Bp // tile_b

    theta_t = theta_t.astype(bf16)
    beta_t = beta_t.astype(bf16)
    disc_t = disc_t.astype(bf16)
    kp_t = kp_t.astype(bf16)

    w1t = w1.astype(bf16).T                                            # [H, K]
    b1t = b1.astype(f32).reshape(-1, 1)                                # [H, 1]
    w2slab = jnp.zeros((8, H), f32).at[0].set(w2.astype(f32).reshape(-1))  # [8, H]
    b2v = b2.astype(f32).reshape(1, 1)                                 # [1, 1]

    batch_spec = lambda rows: pl.BlockSpec((rows, tile_b), lambda i: (0, i))
    param_spec = lambda rows, cols: pl.BlockSpec((rows, cols), lambda i: (0, 0))
    in_specs = [
        batch_spec(K),          # theta^T  (sigmoided, bf16)
        batch_spec(K),          # beta^T   (sigmoided, bf16)
        batch_spec(1),          # disc^T   (sigmoided, bf16)
        batch_spec(K),          # knowledge_point^T (bf16)
        param_spec(H, K),       # W1^T (bf16)
        param_spec(H, 1),       # b1^T (f32)
        param_spec(8, H),       # W2 slab (f32, row 0 real)
        param_spec(1, 1),       # b2
    ]
    out_specs = pl.BlockSpec((1, tile_b), lambda i: (0, i))             # lane-dense

    def run(dim_sem):
        return pl.pallas_call(
            _ncd_kernel,
            out_shape=jax.ShapeDtypeStruct((1, Bp), jnp.float32),
            grid=(n_tiles,),
            in_specs=in_specs,
            out_specs=out_specs,
            compiler_params=pltpu.CompilerParams(
                dimension_semantics=dim_sem,
                vmem_limit_bytes=32 * 1024 * 1024),
        )(theta_t, beta_t, disc_t, kp_t, w1t, b1t, w2slab, b2v)

    if core_parallel and n_tiles >= 2 and n_tiles % 2 == 0:
        # v7x has 2 TensorCores/chip: shard the batch-tile axis across them.
        try:
            return run((pltpu.CORE_PARALLEL,))[0]
        except Exception:
            pass  # single-core chips / runtimes without CORE_PARALLEL support
    return run(("parallel",))[0]


def forward(params, student_id, exercise_id, knowledge_point, mode="train"):
    """BaseModel.forward equivalent (mode has no effect on the math)."""
    bf16 = jnp.bfloat16
    B = student_id.shape[0]

    tile_b = max(128, min(2048, _round_up(B, 128)))
    Bp = _round_up(B, tile_b)

    # Pad the tiny id vectors (not the gathered [K, B] activations).
    sid = jnp.pad(student_id.astype(jnp.int32), (0, Bp - B))
    eid = jnp.pad(exercise_id.astype(jnp.int32), (0, Bp - B))

    # Fold sigmoids into the (small) tables once, store them transposed and in
    # bf16 so the XLA gather directly emits lane-dense [K, Bp] bf16 slabs.
    # TODO(synk): fuse these gathers into the kernel (scalar-prefetched ids +
    # VMEM-resident tables) once a portable in-kernel row-gather is available;
    # a per-row dynamic-slice loop or per-row DMA gather is slower than this.
    theta_t = jnp.take(jax.nn.sigmoid(params["student_emb"]).astype(bf16).T,
                       sid, axis=1)                                   # [K, Bp]
    beta_t = jnp.take(jax.nn.sigmoid(params["exercise_diff"]).astype(bf16).T,
                      eid, axis=1)                                    # [K, Bp]
    disc_t = jnp.take(jax.nn.sigmoid(params["exercise_disc"]).astype(bf16).T,
                      eid, axis=1)                                    # [1, Bp]
    kp_t = jnp.pad(knowledge_point.astype(bf16).T, ((0, 0), (0, Bp - B)))  # [K, Bp]

    pred = _ncd_pallas(theta_t, beta_t, disc_t, kp_t,
                       params["w1"], params["b1"], params["w2"], params["b2"],
                       tile_b=tile_b)
    return pred[:B]


def get_mastery_level(params):
    # Mastery-level matrix (per-student knowledge proficiency), plain JAX glue.
    return jax.nn.sigmoid(params["student_emb"])


def init_params(key, num_students, num_exercises, num_knowledge, hidden):
    ks = jax.random.split(key, 6)
    scale = 0.1
    return {
        "student_emb": scale * jax.random.normal(ks[0], (num_students, num_knowledge), jnp.float32),
        "exercise_diff": scale * jax.random.normal(ks[1], (num_exercises, num_knowledge), jnp.float32),
        "exercise_disc": scale * jax.random.normal(ks[2], (num_exercises, 1), jnp.float32),
        "w1": scale * jax.random.normal(ks[3], (num_knowledge, hidden), jnp.float32),
        "b1": jnp.zeros((1, hidden), jnp.float32),
        "w2": scale * jax.random.normal(ks[4], (hidden, 1), jnp.float32),
        "b2": jnp.zeros((1, 1), jnp.float32),
    }


if __name__ == "__main__":
    # TODO(synk): train_step/test_step/monotonicity (Adam loop, sklearn metrics,
    # DOA) are host-side training orchestration; only forward is implemented.
    key = jax.random.PRNGKey(0)
    num_students, num_exercises, num_knowledge, hidden = 16, 12, 32, 32
    batch = 8

    params = init_params(key, num_students, num_exercises, num_knowledge, hidden)

    k1, k2, k3 = jax.random.split(jax.random.PRNGKey(0), 3)
    student_id = jax.random.randint(k1, (batch,), 0, num_students)
    exercise_id = jax.random.randint(k2, (batch,), 0, num_exercises)
    knowledge_point = (jax.random.uniform(k3, (batch, num_knowledge)) > 0.5).astype(jnp.float32)

    pred = forward(params, student_id, exercise_id, knowledge_point)
    pred = jax.block_until_ready(pred)

    # Reference in plain JAX with the same quantization choices as the kernel:
    # bf16 tables/inputs, f32 interaction, bf16 FC1 operands + f32 accumulate,
    # f32 FC2.
    bf16, f32 = jnp.bfloat16, jnp.float32
    theta = jax.nn.sigmoid(params["student_emb"]).astype(bf16)[student_id].astype(f32)
    beta = jax.nn.sigmoid(params["exercise_diff"]).astype(bf16)[exercise_id].astype(f32)
    disc = jax.nn.sigmoid(params["exercise_disc"]).astype(bf16)[exercise_id].astype(f32)
    kpq = knowledge_point.astype(bf16).astype(f32)
    x = disc * (theta - beta) * kpq
    h = jax.nn.sigmoid(jnp.dot(x.astype(bf16), params["w1"].astype(bf16),
                               preferred_element_type=f32) + params["b1"])
    o = jnp.dot(h, params["w2"].astype(f32), preferred_element_type=f32) + params["b2"]
    ref = jax.nn.sigmoid(o)[:, 0]

    assert pred.shape == (batch,)
    assert jnp.allclose(pred, ref, atol=5e-3), (pred, ref)

    print("KERNEL_OK")
</pallas_src>

<mosaic_0001>
module attributes {stable_mosaic.version = 11 : i64} {
  func.func @_ncd_kernel(%arg0: i32, %arg1: memref<32x128xbf16, #tpu.memory_space<vmem>>, %arg2: memref<32x128xbf16, #tpu.memory_space<vmem>>, %arg3: memref<1x128xbf16, #tpu.memory_space<vmem>>, %arg4: memref<32x128xbf16, #tpu.memory_space<vmem>>, %arg5: memref<32x32xbf16, #tpu.memory_space<vmem>>, %arg6: memref<32x1xf32, #tpu.memory_space<vmem>>, %arg7: memref<8x32xf32, #tpu.memory_space<vmem>>, %arg8: memref<1x1xf32, #tpu.memory_space<vmem>>, %arg9: memref<1x128xf32, #tpu.memory_space<vmem>>) attributes {dimension_semantics = [#tpu.dimension_semantics<parallel>], iteration_bounds = array<i64: 1>, scalar_prefetch = 0 : i64, scratch_operands = 0 : i64, tpu.core_type = #tpu.core_type<tc>, window_params = [{transform_indices = @transform_0, window_bounds = array<i64: 32, 128>}, {transform_indices = @transform_1, window_bounds = array<i64: 32, 128>}, {transform_indices = @transform_2, window_bounds = array<i64: 1, 128>}, {transform_indices = @transform_3, window_bounds = array<i64: 32, 128>}, {pipeline_mode = #tpu.pipeline_mode<synchronous>, transform_indices = @transform_4, window_bounds = array<i64: 32, 32>}, {pipeline_mode = #tpu.pipeline_mode<synchronous>, transform_indices = @transform_5, window_bounds = array<i64: 32, 1>}, {pipeline_mode = #tpu.pipeline_mode<synchronous>, transform_indices = @transform_6, window_bounds = array<i64: 8, 32>}, {pipeline_mode = #tpu.pipeline_mode<synchronous>, transform_indices = @transform_7, window_bounds = array<i64: 1, 1>}, {transform_indices = @transform_8, window_bounds = array<i64: 1, 128>}]} {
    %c0 = arith.constant 0 : index
    %c0_0 = arith.constant 0 : index
    %0 = vector.load %arg3[%c0, %c0_0] : memref<1x128xbf16, #tpu.memory_space<vmem>>, vector<1x128xbf16>
    %1 = arith.extf %0 : vector<1x128xbf16> to vector<1x128xf32>
    %c0_1 = arith.constant 0 : index
    %c0_2 = arith.constant 0 : index
    %2 = vector.load %arg1[%c0_1, %c0_2] : memref<32x128xbf16, #tpu.memory_space<vmem>>, vector<32x128xbf16>
    %3 = arith.extf %2 : vector<32x128xbf16> to vector<32x128xf32>
    %c0_3 = arith.constant 0 : index
    %c0_4 = arith.constant 0 : index
    %4 = vector.load %arg2[%c0_3, %c0_4] : memref<32x128xbf16, #tpu.memory_space<vmem>>, vector<32x128xbf16>
    %5 = arith.extf %4 : vector<32x128xbf16> to vector<32x128xf32>
    %6 = arith.subf %3, %5 : vector<32x128xf32>
    %7 = vector.broadcast %1 : vector<1x128xf32> to vector<32x128xf32>
    %8 = arith.mulf %7, %6 : vector<32x128xf32>
    %c0_5 = arith.constant 0 : index
    %c0_6 = arith.constant 0 : index
    %9 = vector.load %arg4[%c0_5, %c0_6] : memref<32x128xbf16, #tpu.memory_space<vmem>>, vector<32x128xbf16>
    %10 = arith.extf %9 : vector<32x128xbf16> to vector<32x128xf32>
    %11 = arith.mulf %8, %10 : vector<32x128xf32>
    %c0_7 = arith.constant 0 : index
    %c0_8 = arith.constant 0 : index
    %12 = vector.load %arg5[%c0_7, %c0_8] : memref<32x32xbf16, #tpu.memory_space<vmem>>, vector<32x32xbf16>
    %13 = arith.truncf %11 : vector<32x128xf32> to vector<32x128xbf16>
    %cst = arith.constant dense<0.000000e+00> : vector<32x128xf32>
    %14 = tpu.matmul %12, %13, %cst {dimension_numbers = #tpu.dot_dimension_numbers<[1], [0], [0], [1], [0, 0, 1, 1], [], []>} : vector<32x32xbf16>, vector<32x128xbf16>, vector<32x128xf32> -> vector<32x128xf32>
    %c0_9 = arith.constant 0 : index
    %c0_10 = arith.constant 0 : index
    %15 = vector.load %arg6[%c0_9, %c0_10] : memref<32x1xf32, #tpu.memory_space<vmem>>, vector<32x1xf32>
    %16 = vector.broadcast %15 : vector<32x1xf32> to vector<32x128xf32>
    %17 = arith.addf %14, %16 : vector<32x128xf32>
    %cst_11 = arith.constant 5.000000e-01 : f32
    %18 = vector.broadcast %cst_11 : f32 to vector<32x128xf32>
    %19 = arith.mulf %18, %17 : vector<32x128xf32>
    %20 = math.tanh %19 : vector<32x128xf32>
    %cst_12 = arith.constant 1.000000e+00 : f32
    %21 = vector.broadcast %cst_12 : f32 to vector<32x128xf32>
    %22 = arith.addf %20, %21 : vector<32x128xf32>
    %cst_13 = arith.constant 5.000000e-01 : f32
    %23 = vector.broadcast %cst_13 : f32 to vector<32x128xf32>
    %24 = arith.mulf %23, %22 : vector<32x128xf32>
    %c0_14 = arith.constant 0 : index
    %c0_15 = arith.constant 0 : index
    %25 = vector.load %arg7[%c0_14, %c0_15] : memref<8x32xf32, #tpu.memory_space<vmem>>, vector<8x32xf32>
    %cst_16 = arith.constant dense<0.000000e+00> : vector<8x128xf32>
    %26 = tpu.matmul %25, %24, %cst_16 {dimension_numbers = #tpu.dot_dimension_numbers<[1], [0], [0], [1], [0, 0, 1, 1], [], []>} : vector<8x32xf32>, vector<32x128xf32>, vector<8x128xf32> -> vector<8x128xf32>
    %27 = vector.extract_strided_slice %26 {offsets = [0, 0], sizes = [1, 128], strides = [1, 1]} : vector<8x128xf32> to vector<1x128xf32>
    %c0_17 = arith.constant 0 : index
    %c0_18 = arith.constant 0 : index
    %28 = vector.load %arg8[%c0_17, %c0_18] : memref<1x1xf32, #tpu.memory_space<vmem>>, vector<1x1xf32>
    %29 = vector.broadcast %28 : vector<1x1xf32> to vector<1x128xf32>
    %30 = arith.addf %27, %29 : vector<1x128xf32>
    %cst_19 = arith.constant 5.000000e-01 : f32
    %31 = vector.broadcast %cst_19 : f32 to vector<1x128xf32>
    %32 = arith.mulf %31, %30 : vector<1x128xf32>
    %33 = math.tanh %32 : vector<1x128xf32>
    %cst_20 = arith.constant 1.000000e+00 : f32
    %34 = vector.broadcast %cst_20 : f32 to vector<1x128xf32>
    %35 = arith.addf %33, %34 : vector<1x128xf32>
    %cst_21 = arith.constant 5.000000e-01 : f32
    %36 = vector.broadcast %cst_21 : f32 to vector<1x128xf32>
    %37 = arith.mulf %36, %35 : vector<1x128xf32>
    %c0_22 = arith.constant 0 : index
    %c0_23 = arith.constant 0 : index
    %38 = vector.load %arg9[%c0_22, %c0_23] : memref<1x128xf32, #tpu.memory_space<vmem>>, vector<1x128xf32>
    tpu.vector_store %arg9[%c0_22, %c0_23], %37 {strides = array<i32>} : memref<1x128xf32, #tpu.memory_space<vmem>>, vector<1x128xf32>,
    return
  }
  func.func @transform_0(%arg0: i32) -> (i32, i32) {
    %c0_i32 = arith.constant 0 : i32
    %c0_i32_0 = arith.constant 0 : i32
    return %c0_i32, %arg0 : i32, i32
  }
  func.func @transform_1(%arg0: i32) -> (i32, i32) {
    %c0_i32 = arith.constant 0 : i32
    %c0_i32_0 = arith.constant 0 : i32
    return %c0_i32, %arg0 : i32, i32
  }
  func.func @transform_2(%arg0: i32) -> (i32, i32) {
    %c0_i32 = arith.constant 0 : i32
    %c0_i32_0 = arith.constant 0 : i32
    return %c0_i32, %arg0 : i32, i32
  }
  func.func @transform_3(%arg0: i32) -> (i32, i32) {
    %c0_i32 = arith.constant 0 : i32
    %c0_i32_0 = arith.constant 0 : i32
    return %c0_i32, %arg0 : i32, i32
  }
  func.func @transform_4(%arg0: i32) -> (i32, i32) {
    %c0_i32 = arith.constant 0 : i32
    %c0_i32_0 = arith.constant 0 : i32
    %c0_i32_1 = arith.constant 0 : i32
    return %c0_i32, %c0_i32_0 : i32, i32
  }
  func.func @transform_5(%arg0: i32) -> (i32, i32) {
    %c0_i32 = arith.constant 0 : i32
    %c0_i32_0 = arith.constant 0 : i32
    %c0_i32_1 = arith.constant 0 : i32
    return %c0_i32, %c0_i32_0 : i32, i32
  }
  func.func @transform_6(%arg0: i32) -> (i32, i32) {
    %c0_i32 = arith.constant 0 : i32
    %c0_i32_0 = arith.constant 0 : i32
    %c0_i32_1 = arith.constant 0 : i32
    return %c0_i32, %c0_i32_0 : i32, i32
  }
  func.func @transform_7(%arg0: i32) -> (i32, i32) {
    %c0_i32 = arith.constant 0 : i32
    %c0_i32_0 = arith.constant 0 : i32
    %c0_i32_1 = arith.constant 0 : i32
    return %c0_i32, %c0_i32_0 : i32, i32
  }
  func.func @transform_8(%arg0: i32) -> (i32, i32) {
    %c0_i32 = arith.constant 0 : i32
    %c0_i32_0 = arith.constant 0 : i32
    return %c0_i32, %arg0 : i32, i32
  }
}

</mosaic_0001>

<bundles_post_ra>
// kernel: tpu_custom_call.1
= control target key start
LH: loop header
LB: loop body
LE: loop exit
PB: predicated region body
PF: predicated region fallthrough
CT: control target
= control target key end

     0   :  { %s623_s0 = inlined_call_operand.vmem [shape: bf16[32,128], index: 0, kind: input, shape index: {}]   ;;  %s624_s1 = inlined_call_operand.vmem [shape: bf16[32,128], index: 1, kind: input, shape index: {}]   ;;  %s625_s2 = inlined_call_operand.hbm [shape: bf16[1,128], index: 2, kind: input, shape index: {}]   ;;  %s626_s3 = inlined_call_operand.vmem [shape: bf16[32,128], index: 3, kind: input, shape index: {}]   ;;  %s627_s4 = inlined_call_operand.hbm [shape: bf16[32,32], index: 4, kind: input, shape index: {}]   ;;  %s628_s5 = inlined_call_operand.vmem [shape: f32[32,1], index: 5, kind: input, shape index: {}]   ;;  %s629_s6 = inlined_call_operand.vmem [shape: f32[8,32], index: 6, kind: input, shape index: {}]   ;;  %s630_s7 = inlined_call_operand.<no memory space> [shape: f32[1,1], index: 7, kind: input, shape index: {}]   ;;  %s631_s8 = inlined_call_operand.hbm [shape: f32[1,128], index: 8, kind: output, shape index: {}]  }
   0x1   :  { %v13_v0 = vstv %s630_s7 }
   0x2   :  { %14 = vst [vmem:[#allocation2] sm:$0x1] %v13_v0 }
   0x3   :  { %15 = vsyncpa [#allocation4], 0 }
   0x4   :  { %16 = vsyncpa [#allocation7], 0 }
   0x5   :  { %17 = vsyncpa [#allocation5], 0  ;;  %s480_s29 = smov [#allocation3]   ;;  %s481_s9 = smov [#allocation6]  }
   0x6   :  { %s28_s30 = sshll.u32 %s480_s29, 4  ;;  %s39_s10 = sshll.u32 %s481_s9, 4  ;;  %s29_s30 = int_to_ptr.vmem [resolvable:$true] %s28_s30  ;;  %s537_s10 = int_to_ptr.vmem [resolvable:$true] %s39_s10 }
   0x7   :  { %s408_s13 = scalar_lea.hbm %s625_s2, 16 }
   0x8   :  { %p409_p0 = scmp.ne.s32.totalorder %s625_s2, %s408_s13  ;;  %p412_p1 = scmp.lt.u32.totalorder %s408_s13, %s625_s2 }
   0xa   :  { %p414_p2 = pnand %p412_p1, %p409_p0 }
   0xc   :  { %417 = shalt.err (!%p414_p2)
}
   0xd   :  { %s418_s17 = scalar_lea.vmem %s29_s30, 16  ;;  %s422_s18 = scalar_lea.vmem %s29_s30, 32 }
   0xe   :  { %p419_p3 = scmp.ne.s32.totalorder %s29_s30, %s418_s17  ;;  %p423_p4 = scmp.lt.s32.totalorder %s29_s30, %s29_s30 }
   0xf   :  { %p424_p5 = scmp.lt.s32.totalorder %s422_s18, %s418_s17 }
  0x11   :  { %p425_p6 = por %p424_p5, %p423_p4 }
  0x13   :  { %p426_p7 = pnand %p425_p6, %p419_p3 }
  0x15   :  { %429 = shalt.err (!%p426_p7)
}
  0x16   :  { %31 = dma.hbm_to_vmem [thread:$0]  %s625_s2, 16, %s29_s30, [#allocation4]  }
  0x17   :  { %s430_s23 = scalar_lea.hbm %s627_s4, 256 }
  0x18   :  { %p431_p8 = scmp.ne.s32.totalorder %s627_s4, %s430_s23  ;;  %p434_p9 = scmp.lt.u32.totalorder %s430_s23, %s627_s4 }
  0x1a   :  { %p436_p10 = pnand %p434_p9, %p431_p8 }
  0x1c   :  { %439 = shalt.err (!%p436_p10)
}
  0x1d   :  { %s440_s28 = scalar_lea.vmem %s537_s10, 256  ;;  %p445_p12 = scmp.lt.s32.totalorder %s537_s10, %s537_s10 }
  0x1e   :  { %p441_p11 = scmp.ne.s32.totalorder %s537_s10, %s440_s28  ;;  %p446_p13 = scmp.lt.s32.totalorder %s440_s28, %s440_s28 }
  0x20   :  { %p447_p0 = por %p446_p13, %p445_p12 }
  0x22   :  { %p448_p1 = pnand %p447_p0, %p441_p11 }
  0x24   :  { %451 = shalt.err (!%p448_p1)
}
  0x25   :  { %s482_s2 = smov 64   ;;  %s483_s29 = smov 4  }
  0x26   :  { %45 = dma.hbm_to_vmem [thread:$0]  %s627_s4, 256, %s537_s10, [#allocation7], %s482_s2, %s482_s2, %s483_s29  }
  0x27   :  { %474 = dma.done.wait [#allocation4], 16  }
  0x28   :  { %475 = vsyncadd [#allocation4], 4294967280 }
  0x29   :  { %476 = dma.done.wait [#allocation7], 256  }
  0x2a   :  { %477 = vsyncadd [#allocation7], 4294967040  ;;  %v81_v1 = vlaneseq  ;;  %v484_v2 = vmov 0   ;;  %v59_v5 = vld [vmem:[#allocation3] sm:$0x1]  ;;  %v348_v13 = vld [vmem:[%s623_s0 + $0x8] sm:$0xff]  }
  0x2b   :  { %394 = vset.pattern.permute.xlu0 %v484_v2  ;;  %395 = vset.pattern.permute.xlu1 %v484_v2  ;;  %v325_v6 = vld [vmem:[%s623_s0] sm:$0xff]   ;;  %v60_v8 = vunpack.c.l.bf16 %v59_v5  ;;  %v349_v14 = vld [vmem:[%s624_s1 + $0x8] sm:$0xff]   ;;  %v330_v17 = vunpack.c.l.bf16 %v348_v13  ;;  %vm141_vm0 = vcmask 261120   ;;  %v331_v21 = vunpack.c.h.bf16 %v348_v13  ;;  %v109_v31 = vld [vmem:[%s628_s5 + $0x10] sm:$0xff]  ;;  %s488_s26 = smov [#allocation8]  }
  0x2c   :  { %v568_v3 = vshrl.u32 %v81_v1, 7  ;;  %v333_v7 = vld [vmem:[%s624_s1] sm:$0xff]   ;;  %v326_v9 = vunpack.c.l.bf16 %v325_v6  ;;  %v327_v10 = vunpack.c.h.bf16 %v325_v6  ;;  %v350_v18 = vld [vmem:[%s626_s3 + $0x8] sm:$0xff]   ;;  %v338_v22 = vunpack.c.l.bf16 %v349_v14  ;;  %123 = vperm.xlu1 %395, %v109_v31   ;;  %v110_v38 = vld [vmem:[%s628_s5 + $0x18] sm:$0xff]  ;;  %s309_s27 = sshll.u32 %s488_s26, 4  ;;  %s310_s27 = int_to_ptr.vmem [resolvable:$true] %s309_s27 }
  0x2d   :  { %v334_v11 = vunpack.c.l.bf16 %v333_v7  ;;  %v341_v12 = vld [vmem:[%s626_s3] sm:$0xff]   ;;  %v335_v15 = vunpack.c.h.bf16 %v333_v7  ;;  %v339_v26 = vunpack.c.h.bf16 %v349_v14  ;;  %v346_v30 = vunpack.c.l.bf16 %v350_v18  ;;  %v108_v35 = vld [vmem:[%s628_s5 + $0x8] sm:$0xff]  ;;  %s452_s28 = scalar_lea.vmem %s310_s27, 16  ;;  %p457_p3 = scmp.lt.s32.totalorder %s310_s27, %s310_s27 }
  0x2e   :  { %v83_v4 = vsub.s32 0, %v568_v3  ;;  %v342_v16 = vunpack.c.l.bf16 %v341_v12  ;;  %v396_v23 = vld [vmem:[#allocation6] sm:$0xff]   ;;  %v343_v25 = vunpack.c.h.bf16 %v341_v12  ;;  %v79_v29 = vsub.f32 %v330_v17, %v338_v22  ;;  %v287_v44 = vld [vmem:[#allocation2] sm:$0x1]  ;;  %v397_v46 = vld [vmem:[#allocation6 + $0x8] sm:$0xff]   ;;  %p453_p2 = scmp.ne.s32.totalorder %s310_s27, %s452_s28 }
  0x2f   :  { %v77_v19 = vsub.f32 %v326_v9, %v334_v11  ;;  %v78_v24 = vsub.f32 %v327_v10, %v335_v15  ;;  %v107_v27 = vld [vmem:[%s628_s5] sm:$0xff]  ;;  %364 = vmatprep.mubr.msk.bf16.mxu0 %vm141_vm0, %v396_v23  ;;  %v80_v33 = vsub.f32 %v331_v21, %v339_v26  ;;  %v347_v34 = vunpack.c.h.bf16 %v350_v18 }
  0x30   :  { %v84_v20 = vrot.slane %v60_v8, %v83_v4  ;;  %113 = vperm.xlu0 %394, %v107_v27   ;;  %128 = vperm.xlu1 %395, %v110_v38   ;;  %v485_v47 = vmov 0.0|0.0   ;;  %vm486_vm1 = vmmov 0   ;;  %v487_v48 = vmov 0.0   ;;  %v213_v17 = vld [vmem:[%s629_s6] sm:$0xff]  ;;  %s456_s6 = scalar_lea.vmem %s310_s27, 32 }
  0x31   :  { %379 = vmatprep.subr.bf16.mxu1 %v485_v47  ;;  %376 = vmatprep.mubr.msk.f32.mxu1 %vm486_vm1, %v487_v48  ;;  %p458_p4 = scmp.lt.s32.totalorder %s456_s6, %s452_s28 }
  0x32   :  { %v85_v28 = vmul.f32 %v84_v20, %v77_v19  ;;  %v86_v32 = vmul.f32 %v84_v20, %v78_v24  ;;  %v87_v37 = vmul.f32 %v84_v20, %v79_v29  ;;  %v88_v40 = vmul.f32 %v84_v20, %v80_v33 }
  0x33   :  { %p459_p5 = por %p458_p4, %p457_p3 }
  0x34   :  { %v97_v36 = vmul.f32 %v342_v16, %v85_v28  ;;  %v98_v39 = vmul.f32 %v343_v25, %v86_v32  ;;  %v99_v41 = vmul.f32 %v346_v30, %v87_v37  ;;  %118 = vperm.xlu0 %394, %v108_v35   ;;  %v100_v43 = vmul.f32 %v347_v34, %v88_v40 }
  0x35   :  { %p460_p6 = pnand %p459_p5, %p453_p2 }
  0x36   :  { %v105_v42 = vpack.c.bf16 %v98_v39, %v97_v36  ;;  %v106_v45 = vpack.c.bf16 %v100_v43, %v99_v41 }
  0x38   :  { %360 = vmatprep.subr.bf16.mxu0 %v105_v42  ;;  %290 = vperm.xlu0 %394, %v287_v44  }
  0x39   :  { %361 = vmatpush3.bf16.msra.mxu0 %v105_v42 }
  0x3a   :  { %362 = vmatprep.subr.bf16.mxu0 %v106_v45 }
  0x3d   :  { %363 = vmatpush3.bf16.msra.mxu0 %v106_v45 }
  0x40   :  { %365 = vmatmul.mubr.msk.bf16.vlgmr.msra.gmra.mrb[0].mxu0 %vm141_vm0, %v397_v46 }
  0xab   :  { %v124_v49 = vpop.permute.xlu1 %123 }
  0xaf   :  { %v114_v50 = vpop.permute.xlu0 %113  ;;  %v129_v52 = vpop.permute.xlu1 %128 }
  0xb3   :  { %v119_v57 = vpop.permute.xlu0 %118 }
  0xb7   :  { %v291_v18 = vpop.permute.xlu0 %290 }
  0xb8   :  { %v296_v19 = vrot.slane %v291_v18, %v83_v4 }
 0x113   :  { %v366_v51 = vpop.f32.mrb[0].mxu0 }
 0x114   :  { %v191_v53 = vadd.f32 %v366_v51, %v124_v49  ;;  %v182_v54 = vpop.f32.mrb[1].mxu0 }
 0x115   :  { %v183_v55 = vadd.f32 %v182_v54, %v114_v50  ;;  %v367_v56 = vpop.f32.mrb[2].mxu0 }
 0x116   :  { %v199_v58 = vmul.f32 0.5, %v191_v53  ;;  %v194_v59 = vadd.f32 %v367_v56, %v129_v52  ;;  %v185_v60 = vpop.f32.mrb[3].mxu0 }
 0x117   :  { %v197_v61 = vmul.f32 0.5, %v183_v55  ;;  %v186_v62 = vadd.f32 %v185_v60, %v119_v57 }
 0x118   :  { %398 = vtanh.f32 %v199_v58  ;;  %v200_v63 = vmul.f32 0.5, %v194_v59 }
 0x119   :  { %400 = vtanh.f32 %v197_v61  ;;  %v198_v0 = vmul.f32 0.5, %v186_v62 }
 0x11a   :  { %402 = vtanh.f32 %v200_v63 }
 0x11b   :  { %404 = vtanh.f32 %v198_v0 }
 0x122   :  { %v399_v1 = vpop.eup %398 }
 0x123   :  { %v401_v2 = vpop.eup %400  ;;  %v207_v5 = vadd.f32 1.0, %v399_v1 }
 0x124   :  { %v403_v6 = vpop.eup %402  ;;  %v205_v7 = vadd.f32 1.0, %v401_v2 }
 0x125   :  { %v405_v8 = vpop.eup %404  ;;  %v208_v9 = vadd.f32 1.0, %v403_v6  ;;  %v211_v11 = vmul.f32 0.5, %v207_v5 }
 0x126   :  { %v206_v10 = vadd.f32 1.0, %v405_v8  ;;  %v209_v13 = vmul.f32 0.5, %v205_v7 }
 0x127   :  { %v212_v12 = vmul.f32 0.5, %v208_v9 }
 0x128   :  { %v210_v14 = vmul.f32 0.5, %v206_v10 }
 0x129   :  { %v383_v15 = vpack.c.bf16 %v212_v12, %v211_v11 }
 0x12a   :  { %v380_v16 = vpack.c.bf16 %v210_v14, %v209_v13 }
 0x12c   :  { %381 = vmatpush3.bf16.msra.mxu1 %v380_v16 }
 0x12d   :  { %382 = vmatprep.subr.bf16.mxu1 %v485_v47 }
 0x130   :  { %384 = vmatpush3.bf16.msra.mxu1 %v383_v15 }
 0x133   :  { %377 = vmatmul.mubr.msk.f32.vlgmr.msra.gmra.mrb[0].mxu1 %vm141_vm0, %v213_v17 }
 0x206   :  { %v283_v20 = vpop.f32.mrb[0].mxu1 }
 0x207   :  { %v297_v21 = vadd.f32 %v296_v19, %v283_v20  ;;  %v378_v22 = vpop.f32.mrb[1].mxu1 }
 0x209   :  { %v298_v23 = vmul.f32 0.5, %v297_v21 }
 0x20b   :  { %406 = vtanh.f32 %v298_v23 }
 0x215   :  { %v407_v24 = vpop.eup %406 }
 0x216   :  { %v300_v25 = vadd.f32 1.0, %v407_v24 }
 0x218   :  { %v301_v26 = vmul.f32 0.5, %v300_v25 }
 0x21a   :  { %302 = vst [vmem:[#allocation8] sm:$0x1] %v301_v26 }
 0x21b   :  { %463 = shalt.err (!%p460_p6)
}
 0x21c   :  { %s464_s30 = scalar_lea.hbm %s631_s8, 16 }
 0x21d   :  { %p465_p7 = scmp.ne.s32.totalorder %s631_s8, %s464_s30  ;;  %p468_p8 = scmp.lt.u32.totalorder %s464_s30, %s631_s8 }
 0x21f   :  { %p470_p9 = pnand %p468_p8, %p465_p7 }
 0x221   :  { %473 = shalt.err (!%p470_p9)
}
 0x222   :  { %312 = dma.vmem_to_hbm [thread:$0]  %s310_s27, 16, %s631_s8, [#allocation5]  }
 0x223   :  { %478 = dma.done.wait [#allocation5], 16  }
 0x224   :  { %479 = vsyncadd [#allocation5], 4294967280 }
 0x225   :  { %316 = vsyncpa [#allocation4], 1 }
 0x226   :  { %317 = vsyncpa [#allocation7], 1 }
 0x227   :  { %318 = vsyncpa [#allocation5], 1 }

</bundles_post_ra>
